<compile_context>
chip_gen: v7x
topology: tpu7x:2x2x1
jax: 0.10.0
libtpu: 0.0.40
codegen_flags: <defaults>
</compile_context>

<pallas_src>
import functools

import jax
import jax.numpy as jnp
import numpy as np
from jax.experimental import pallas as pl
from jax.experimental.pallas import tpu as pltpu


def _round_up(x, m):
    return (x + m - 1) // m * m


def _decfm_rate_kernel(batch, tile_b, rescale_rate,
                       bias_ref,
                       user_ref, item_ref, cate_ref, rate_ref,
                       sc_ref, qc_ref,
                       dpart_ref, rpart_ref):
    u = user_ref[...].astype(jnp.float32)      # (TB, D) user_embs(user)
    it = item_ref[...].astype(jnp.float32)     # (TB, D) item_embs(item)
    c = cate_ref[...].astype(jnp.float32)      # (TB, D) cate_embs(cate)
    rate = rate_ref[...].astype(jnp.float32)   # (TB, 1)
    s_c = sc_ref[...].astype(jnp.float32)      # (1, D)  sum_c prior_c*W_c
    q_c = qc_ref[...].astype(jnp.float32)      # (1, D)  sum_c (prior_c*W_c)^2
    bias = bias_ref[0]                         # bias_ parameter (SMEM scalar)

    # FM over cat([user_emb, weighted_cate_embs], dim=1) along the field axis:
    #   sum over fields       = u + sum_c w
    #   sum of squared fields = u^2 + sum_c w^2
    sum_conf = u + s_c
    sqr_sum_conf = u * u + q_c
    mediator = 0.5 * (sum_conf * sum_conf - sqr_sum_conf)    # (TB, D)

    # FM over the 4 fields [user, item, cate, user_confounder_mediator].
    s = u + it + c + mediator
    q = u * u + it * it + c * c + mediator * mediator
    fm_out = 0.5 * (s * s - q)                               # (TB, D)

    # nn.Dropout applied as identity (eval semantics / droprate == 0).
    # TODO(synk): training-mode dropout would need pltpu PRNG and cannot
    #             reproduce torch's RNG stream bit-for-bit.
    logits = jnp.sum(fm_out, axis=-1, keepdims=True) + bias  # (TB, 1)

    pred = logits
    if rescale_rate:
        # exact sigmoid for numerical parity (pl.reciprocal(approx=True) would
        # move the divide onto the EUP but loosens the tolerance).
        pred = 1.0 + 4.0 / (1.0 + jnp.exp(-logits))

    # Mask rows past the true batch size (ragged last tile).
    row0 = pl.program_id(0) * tile_b
    rows = jax.lax.broadcasted_iota(jnp.int32, (tile_b, 1), 0) + row0
    valid = (rows < batch).astype(jnp.float32)

    diff = (pred - rate) * valid
    dsum = jnp.sum(diff * diff)                              # per-tile SSE
    # Embedding pads are zero-filled -> contribute nothing to the regularizer.
    rsum = jnp.sum(u * u) + jnp.sum(it * it) + jnp.sum(c * c)

    # Lane-dense full (8,128) tile stores; final reduction done in JAX so the
    # grid axis stays "parallel".
    dpart_ref[...] = jnp.full(dpart_ref.shape, dsum, dtype=dpart_ref.dtype)
    rpart_ref[...] = jnp.full(rpart_ref.shape, rsum, dtype=rpart_ref.dtype)


def decfm_rate_loss(user_e, item_e, cate_e, cate_table, cate_prior,
                    rate, bias, l2rg, rescale_rate=True, tile_b=512):
    """Pallas-backed DecFM_rate.forward (returns the scalar training loss)."""
    batch, dim = user_e.shape

    # Batch-invariant category-table reductions hoisted out of the kernel.
    prior = cate_prior.astype(jnp.float32).reshape(-1, 1)          # (C, 1)
    w = cate_table.astype(jnp.float32) * prior                     # (C, D)
    s_c = jnp.sum(w, axis=0, keepdims=True)                        # (1, D)
    q_c = jnp.sum(w * w, axis=0, keepdims=True)                    # (1, D)

    tile_b = max(8, min(_round_up(tile_b, 8), _round_up(batch, 8)))
    b_pad = _round_up(batch, tile_b)
    num_tiles = b_pad // tile_b

    def pad_rows(x):
        return jnp.pad(x, ((0, b_pad - batch), (0, 0)))

    user_p = pad_rows(user_e)
    item_p = pad_rows(item_e)
    cate_p = pad_rows(cate_e)
    rate_p = pad_rows(rate.astype(jnp.float32).reshape(batch, 1))
    bias1 = jnp.asarray(bias, jnp.float32).reshape(1)

    kernel = functools.partial(_decfm_rate_kernel, batch, tile_b, rescale_rate)

    emb_spec = pl.BlockSpec((tile_b, dim), lambda i: (i, 0))
    rate_spec = pl.BlockSpec((tile_b, 1), lambda i: (i, 0))
    vec_spec = pl.BlockSpec((1, dim), lambda i: (0, 0))
    smem_spec = pl.BlockSpec(memory_space=pltpu.MemorySpace.SMEM)
    out_spec = pl.BlockSpec((1, 8, 128), lambda i: (i, 0, 0))

    d_part, r_part = pl.pallas_call(
        kernel,
        grid=(num_tiles,),
        in_specs=[smem_spec, emb_spec, emb_spec, emb_spec, rate_spec,
                  vec_spec, vec_spec],
        out_specs=[out_spec, out_spec],
        out_shape=[jax.ShapeDtypeStruct((num_tiles, 8, 128), jnp.float32),
                   jax.ShapeDtypeStruct((num_tiles, 8, 128), jnp.float32)],
        compiler_params=pltpu.CompilerParams(
            dimension_semantics=("parallel",),
            vmem_limit_bytes=32 * 1024 * 1024),
    )(bias1, user_p, item_p, cate_p, rate_p, s_c, q_c)

    dsum = jnp.sum(d_part[:, 0, 0])
    rsum = jnp.sum(r_part[:, 0, 0])
    batch_f = jnp.float32(batch)
    rate_loss = dsum / batch_f                 # F.mse_loss (mean over batch)
    emb_loss = 0.5 * rsum / batch_f            # (||u||^2+||i||^2+||c||^2)/2/B
    return rate_loss + l2rg * emb_loss


def _reference_loss(user_w, item_w, cate_w, cate_prior,
                    user, item, cate, rate, bias, l2rg, rescale_rate):
    """Plain-JAX transcription of the PyTorch forward for verification."""
    dim = user_w.shape[1]
    batch = user.shape[0]
    user_emb = user_w[user].reshape(batch, 1, dim)
    item_emb = item_w[item].reshape(batch, 1, dim)
    cate_emb = cate_w[cate].reshape(batch, 1, dim)
    weighted = cate_w * cate_prior[:, None]
    weighted = jnp.broadcast_to(weighted[None], (batch,) + weighted.shape)
    uc = jnp.concatenate([user_emb, weighted], axis=1)
    med = 0.5 * (uc.sum(1) ** 2 - (uc ** 2).sum(1))
    fm_emb = jnp.concatenate([user_emb, item_emb, cate_emb, med[:, None, :]], axis=1)
    fm_out = 0.5 * (fm_emb.sum(1) ** 2 - (fm_emb ** 2).sum(1))
    logits = fm_out.sum(-1) + bias
    pred = 1.0 + 4.0 * jax.nn.sigmoid(logits) if rescale_rate else logits
    rate_loss = jnp.mean((pred - rate.astype(jnp.float32)) ** 2)
    reg = (jnp.sum(user_emb ** 2) + jnp.sum(item_emb ** 2) + jnp.sum(cate_emb ** 2)) / 2
    return rate_loss + l2rg * reg / batch


if __name__ == "__main__":
    # Small, module-consistent sizes.
    user_num, item_num, cate_num = 50, 100, 16
    dim = 32            # args.edim
    l2rg = 0.01         # args.l2rg
    rescale_rate = True # args.rescale_rate

    key = jax.random.PRNGKey(0)
    k_u, k_i, k_c, k_p, key = jax.random.split(key, 5)

    # nn.init.normal_(std=0.01) on the embedding tables.
    user_w = 0.01 * jax.random.normal(k_u, (user_num, dim), jnp.float32)
    item_w = 0.01 * jax.random.normal(k_i, (item_num, dim), jnp.float32)
    cate_w = 0.01 * jax.random.normal(k_c, (cate_num, dim), jnp.float32)
    bias_ = jnp.array([0.0], jnp.float32)

    # cate_prior: a probability vector over categories.
    prior_raw = jax.random.uniform(k_p, (cate_num,), jnp.float32)
    cate_prior = prior_raw / prior_raw.sum()

    # Two cases: single-tile tiny batch, and multi-tile grid with a ragged
    # last tile (exercises masking + per-tile partial reduction).
    for batch, tile_b in ((8, 512), (300, 128)):
        k_uid, k_iid, k_cid, k_r, key = jax.random.split(key, 5)
        user_ids = jax.random.randint(k_uid, (batch,), 1, user_num)
        item_ids = jax.random.randint(k_iid, (batch,), 1, item_num)
        cate_ids = jax.random.randint(k_cid, (batch,), 1, cate_num)
        rate = jax.random.randint(k_r, (batch,), 1, 6).astype(jnp.float32)

        # Embedding lookups (gather) are glue — done in plain JAX.
        user_e = user_w[user_ids]
        item_e = item_w[item_ids]
        cate_e = cate_w[cate_ids]

        loss = decfm_rate_loss(user_e, item_e, cate_e, cate_w, cate_prior,
                               rate, bias_, l2rg,
                               rescale_rate=rescale_rate, tile_b=tile_b)
        loss = jax.block_until_ready(loss)

        ref = _reference_loss(user_w, item_w, cate_w, cate_prior,
                              user_ids, item_ids, cate_ids, rate,
                              bias_[0], l2rg, rescale_rate)
        ref = jax.block_until_ready(ref)

        np.testing.assert_allclose(np.asarray(loss), np.asarray(ref),
                                   rtol=1e-5, atol=1e-5)

    print("KERNEL_OK")
</pallas_src>

<mosaic_0001>
module attributes {stable_mosaic.version = 11 : i64} {
  func.func @_decfm_rate_kernel(%arg0: i32, %arg1: memref<1xf32, #tpu.memory_space<smem>>, %arg2: memref<8x32xf32, #tpu.memory_space<vmem>>, %arg3: memref<8x32xf32, #tpu.memory_space<vmem>>, %arg4: memref<8x32xf32, #tpu.memory_space<vmem>>, %arg5: memref<8x1xf32, #tpu.memory_space<vmem>>, %arg6: memref<1x32xf32, #tpu.memory_space<vmem>>, %arg7: memref<1x32xf32, #tpu.memory_space<vmem>>, %arg8: memref<1x8x128xf32, #tpu.memory_space<vmem>>, %arg9: memref<1x8x128xf32, #tpu.memory_space<vmem>>) attributes {dimension_semantics = [#tpu.dimension_semantics<parallel>], iteration_bounds = array<i64: 1>, scalar_prefetch = 0 : i64, scratch_operands = 0 : i64, tpu.core_type = #tpu.core_type<tc>, window_params = [{transform_indices = @transform_0, window_bounds = array<i64: 1>}, {transform_indices = @transform_1, window_bounds = array<i64: 8, 32>}, {transform_indices = @transform_2, window_bounds = array<i64: 8, 32>}, {transform_indices = @transform_3, window_bounds = array<i64: 8, 32>}, {transform_indices = @transform_4, window_bounds = array<i64: 8, 1>}, {pipeline_mode = #tpu.pipeline_mode<synchronous>, transform_indices = @transform_5, window_bounds = array<i64: 1, 32>}, {pipeline_mode = #tpu.pipeline_mode<synchronous>, transform_indices = @transform_6, window_bounds = array<i64: 1, 32>}, {transform_indices = @transform_7, window_bounds = array<i64: 1, 8, 128>}, {transform_indices = @transform_8, window_bounds = array<i64: 1, 8, 128>}]} {
    %c0 = arith.constant 0 : index
    %c0_0 = arith.constant 0 : index
    %0 = vector.load %arg2[%c0, %c0_0] : memref<8x32xf32, #tpu.memory_space<vmem>>, vector<8x32xf32>
    %c0_1 = arith.constant 0 : index
    %c0_2 = arith.constant 0 : index
    %1 = vector.load %arg3[%c0_1, %c0_2] : memref<8x32xf32, #tpu.memory_space<vmem>>, vector<8x32xf32>
    %c0_3 = arith.constant 0 : index
    %c0_4 = arith.constant 0 : index
    %2 = vector.load %arg4[%c0_3, %c0_4] : memref<8x32xf32, #tpu.memory_space<vmem>>, vector<8x32xf32>
    %c0_5 = arith.constant 0 : index
    %c0_6 = arith.constant 0 : index
    %3 = vector.load %arg5[%c0_5, %c0_6] : memref<8x1xf32, #tpu.memory_space<vmem>>, vector<8x1xf32>
    %c0_7 = arith.constant 0 : index
    %c0_8 = arith.constant 0 : index
    %4 = vector.load %arg6[%c0_7, %c0_8] : memref<1x32xf32, #tpu.memory_space<vmem>>, vector<1x32xf32>
    %c0_9 = arith.constant 0 : index
    %c0_10 = arith.constant 0 : index
    %5 = vector.load %arg7[%c0_9, %c0_10] : memref<1x32xf32, #tpu.memory_space<vmem>>, vector<1x32xf32>
    %c0_11 = arith.constant 0 : index
    %6 = memref.load %arg1[%c0_11] : memref<1xf32, #tpu.memory_space<smem>>
    %7 = vector.broadcast %4 : vector<1x32xf32> to vector<8x32xf32>
    %8 = arith.addf %0, %7 : vector<8x32xf32>
    %9 = arith.mulf %0, %0 : vector<8x32xf32>
    %10 = vector.broadcast %5 : vector<1x32xf32> to vector<8x32xf32>
    %11 = arith.addf %9, %10 : vector<8x32xf32>
    %12 = arith.mulf %8, %8 : vector<8x32xf32>
    %13 = arith.subf %12, %11 : vector<8x32xf32>
    %cst = arith.constant 5.000000e-01 : f32
    %14 = vector.broadcast %cst : f32 to vector<8x32xf32>
    %15 = arith.mulf %14, %13 : vector<8x32xf32>
    %16 = arith.addf %0, %1 : vector<8x32xf32>
    %17 = arith.addf %16, %2 : vector<8x32xf32>
    %18 = arith.addf %17, %15 : vector<8x32xf32>
    %19 = arith.mulf %0, %0 : vector<8x32xf32>
    %20 = arith.mulf %1, %1 : vector<8x32xf32>
    %21 = arith.addf %19, %20 : vector<8x32xf32>
    %22 = arith.mulf %2, %2 : vector<8x32xf32>
    %23 = arith.addf %21, %22 : vector<8x32xf32>
    %24 = arith.mulf %15, %15 : vector<8x32xf32>
    %25 = arith.addf %23, %24 : vector<8x32xf32>
    %26 = arith.mulf %18, %18 : vector<8x32xf32>
    %27 = arith.subf %26, %25 : vector<8x32xf32>
    %cst_12 = arith.constant 5.000000e-01 : f32
    %28 = vector.broadcast %cst_12 : f32 to vector<8x32xf32>
    %29 = arith.mulf %28, %27 : vector<8x32xf32>
    %cst_13 = arith.constant dense<0.000000e+00> : vector<8xf32>
    %30 = vector.multi_reduction <add>, %29, %cst_13 [1] : vector<8x32xf32> to vector<8xf32>
    %31 = vector.shape_cast %30 : vector<8xf32> to vector<8x1xf32>
    %32 = vector.broadcast %6 : f32 to vector<8x1xf32>
    %33 = arith.addf %31, %32 : vector<8x1xf32>
    %cst_14 = arith.constant 0.000000e+00 : f32
    %34 = vector.broadcast %cst_14 : f32 to vector<8x1xf32>
    %35 = arith.subf %34, %33 : vector<8x1xf32>
    %36 = math.exp %35 : vector<8x1xf32>
    %cst_15 = arith.constant 1.000000e+00 : f32
    %37 = vector.broadcast %cst_15 : f32 to vector<8x1xf32>
    %38 = arith.addf %37, %36 : vector<8x1xf32>
    %cst_16 = arith.constant 4.000000e+00 : f32
    %39 = vector.broadcast %cst_16 : f32 to vector<8x1xf32>
    %40 = arith.divf %39, %38 : vector<8x1xf32>
    %cst_17 = arith.constant 1.000000e+00 : f32
    %41 = vector.broadcast %cst_17 : f32 to vector<8x1xf32>
    %42 = arith.addf %41, %40 : vector<8x1xf32>
    %c8_i32 = arith.constant 8 : i32
    %43 = arith.muli %arg0, %c8_i32 : i32
    %44 = tpu.iota {dimensions = array<i32: 0>} : vector<8x1xi32>
    %45 = vector.broadcast %43 : i32 to vector<8x1xi32>
    %46 = arith.addi %44, %45 : vector<8x1xi32>
    %c8_i32_18 = arith.constant 8 : i32
    %47 = vector.broadcast %c8_i32_18 : i32 to vector<8x1xi32>
    %48 = arith.cmpi slt, %46, %47 : vector<8x1xi32>
    %49 = arith.extui %48 : vector<8x1xi1> to vector<8x1xi32>
    %50 = arith.sitofp %49 : vector<8x1xi32> to vector<8x1xf32>
    %51 = arith.subf %42, %3 : vector<8x1xf32>
    %52 = arith.mulf %51, %50 : vector<8x1xf32>
    %53 = arith.mulf %52, %52 : vector<8x1xf32>
    %54 = vector.shape_cast %53 : vector<8x1xf32> to vector<1x8x1xf32>
    %cst_19 = arith.constant dense<0.000000e+00> : vector<1xf32>
    %55 = vector.multi_reduction <add>, %54, %cst_19 [1, 2] : vector<1x8x1xf32> to vector<1xf32>
    %56 = vector.shape_cast %55 : vector<1xf32> to vector<1x1x1xf32>
    %57 = vector.extract %56[0, 0, 0] : f32 from vector<1x1x1xf32>
    %58 = arith.mulf %0, %0 : vector<8x32xf32>
    %59 = vector.shape_cast %58 : vector<8x32xf32> to vector<1x8x32xf32>
    %cst_20 = arith.constant dense<0.000000e+00> : vector<1xf32>
    %60 = vector.multi_reduction <add>, %59, %cst_20 [1, 2] : vector<1x8x32xf32> to vector<1xf32>
    %61 = vector.shape_cast %60 : vector<1xf32> to vector<1x1x1xf32>
    %62 = vector.extract %61[0, 0, 0] : f32 from vector<1x1x1xf32>
    %63 = arith.mulf %1, %1 : vector<8x32xf32>
    %64 = vector.shape_cast %63 : vector<8x32xf32> to vector<1x8x32xf32>
    %cst_21 = arith.constant dense<0.000000e+00> : vector<1xf32>
    %65 = vector.multi_reduction <add>, %64, %cst_21 [1, 2] : vector<1x8x32xf32> to vector<1xf32>
    %66 = vector.shape_cast %65 : vector<1xf32> to vector<1x1x1xf32>
    %67 = vector.extract %66[0, 0, 0] : f32 from vector<1x1x1xf32>
    %68 = arith.addf %62, %67 : f32
    %69 = arith.mulf %2, %2 : vector<8x32xf32>
    %70 = vector.shape_cast %69 : vector<8x32xf32> to vector<1x8x32xf32>
    %cst_22 = arith.constant dense<0.000000e+00> : vector<1xf32>
    %71 = vector.multi_reduction <add>, %70, %cst_22 [1, 2] : vector<1x8x32xf32> to vector<1xf32>
    %72 = vector.shape_cast %71 : vector<1xf32> to vector<1x1x1xf32>
    %73 = vector.extract %72[0, 0, 0] : f32 from vector<1x1x1xf32>
    %74 = arith.addf %68, %73 : f32
    %75 = vector.broadcast %57 : f32 to vector<1x8x128xf32>
    %c0_23 = arith.constant 0 : index
    %c0_24 = arith.constant 0 : index
    %c0_25 = arith.constant 0 : index
    %76 = vector.load %arg8[%c0_23, %c0_24, %c0_25] : memref<1x8x128xf32, #tpu.memory_space<vmem>>, vector<1x8x128xf32>
    tpu.vector_store %arg8[%c0_23, %c0_24, %c0_25], %75 {strides = array<i32>} : memref<1x8x128xf32, #tpu.memory_space<vmem>>, vector<1x8x128xf32>,
    %77 = vector.broadcast %74 : f32 to vector<1x8x128xf32>
    %c0_26 = arith.constant 0 : index
    %c0_27 = arith.constant 0 : index
    %c0_28 = arith.constant 0 : index
    %78 = vector.load %arg9[%c0_26, %c0_27, %c0_28] : memref<1x8x128xf32, #tpu.memory_space<vmem>>, vector<1x8x128xf32>
    tpu.vector_store %arg9[%c0_26, %c0_27, %c0_28], %77 {strides = array<i32>} : memref<1x8x128xf32, #tpu.memory_space<vmem>>, vector<1x8x128xf32>,
    return
  }
  func.func @transform_0(%arg0: i32) -> i32 {
    %c0_i32 = arith.constant 0 : i32
    %c0_i32_0 = arith.constant 0 : i32
    return %c0_i32 : i32
  }
  func.func @transform_1(%arg0: i32) -> (i32, i32) {
    %c0_i32 = arith.constant 0 : i32
    %c0_i32_0 = arith.constant 0 : i32
    return %arg0, %c0_i32 : i32, i32
  }
  func.func @transform_2(%arg0: i32) -> (i32, i32) {
    %c0_i32 = arith.constant 0 : i32
    %c0_i32_0 = arith.constant 0 : i32
    return %arg0, %c0_i32 : i32, i32
  }
  func.func @transform_3(%arg0: i32) -> (i32, i32) {
    %c0_i32 = arith.constant 0 : i32
    %c0_i32_0 = arith.constant 0 : i32
    return %arg0, %c0_i32 : i32, i32
  }
  func.func @transform_4(%arg0: i32) -> (i32, i32) {
    %c0_i32 = arith.constant 0 : i32
    %c0_i32_0 = arith.constant 0 : i32
    return %arg0, %c0_i32 : i32, i32
  }
  func.func @transform_5(%arg0: i32) -> (i32, i32) {
    %c0_i32 = arith.constant 0 : i32
    %c0_i32_0 = arith.constant 0 : i32
    %c0_i32_1 = arith.constant 0 : i32
    return %c0_i32, %c0_i32_0 : i32, i32
  }
  func.func @transform_6(%arg0: i32) -> (i32, i32) {
    %c0_i32 = arith.constant 0 : i32
    %c0_i32_0 = arith.constant 0 : i32
    %c0_i32_1 = arith.constant 0 : i32
    return %c0_i32, %c0_i32_0 : i32, i32
  }
  func.func @transform_7(%arg0: i32) -> (i32, i32, i32) {
    %c0_i32 = arith.constant 0 : i32
    %c0_i32_0 = arith.constant 0 : i32
    %c0_i32_1 = arith.constant 0 : i32
    return %arg0, %c0_i32, %c0_i32_0 : i32, i32, i32
  }
  func.func @transform_8(%arg0: i32) -> (i32, i32, i32) {
    %c0_i32 = arith.constant 0 : i32
    %c0_i32_0 = arith.constant 0 : i32
    %c0_i32_1 = arith.constant 0 : i32
    return %arg0, %c0_i32, %c0_i32_0 : i32, i32, i32
  }
}

</mosaic_0001>

<bundles_post_ra>
// kernel: tpu_custom_call.1
= control target key start
LH: loop header
LB: loop body
LE: loop exit
PB: predicated region body
PF: predicated region fallthrough
CT: control target
= control target key end

     0   :  { %15 = vsyncpa [#allocation4], 0  ;;  %s375_s0 = inlined_call_operand.<no memory space> [shape: f32[1], index: 0, kind: input, shape index: {}]   ;;  %s376_s1 = inlined_call_operand.vmem [shape: f32[8,32], index: 1, kind: input, shape index: {}]   ;;  %s377_s2 = inlined_call_operand.vmem [shape: f32[8,32], index: 2, kind: input, shape index: {}]   ;;  %s378_s3 = inlined_call_operand.hbm [shape: f32[8,32], index: 3, kind: input, shape index: {}]   ;;  %s379_s4 = inlined_call_operand.vmem [shape: f32[8,1], index: 4, kind: input, shape index: {}]   ;;  %s380_s5 = inlined_call_operand.vmem [shape: f32[1,32], index: 5, kind: input, shape index: {}]   ;;  %s381_s6 = inlined_call_operand.vmem [shape: f32[1,32], index: 6, kind: input, shape index: {}]   ;;  %s382_s7 = inlined_call_operand.hbm [shape: f32[1,8,128], index: 7, kind: output, shape index: {0}]   ;;  %s383_s8 = inlined_call_operand.hbm [shape: f32[1,8,128], index: 8, kind: output, shape index: {1}]  }
   0x1   :  { %16 = vsyncpa [#allocation5], 0 }
   0x2   :  { %17 = vsyncpa [#allocation8], 0  ;;  %s269_s27 = smov [#allocation3]   ;;  %s197_s9 = scalar_lea.hbm %s378_s3, 128 }
   0x3   :  { %s30_s28 = sshll.u32 %s269_s27, 4  ;;  %p198_p0 = scmp.ne.s32.totalorder %s378_s3, %s197_s9  ;;  %s31_s28 = int_to_ptr.vmem [resolvable:$true] %s30_s28 }
   0x4   :  { %p201_p1 = scmp.lt.u32.totalorder %s197_s9, %s378_s3 }
   0x6   :  { %p203_p2 = pnand %p201_p1, %p198_p0 }
   0x8   :  { %206 = shalt.err (!%p203_p2)
}
   0x9   :  { %s207_s14 = scalar_lea.vmem %s31_s28, 128  ;;  %p212_p4 = scmp.lt.s32.totalorder %s31_s28, %s31_s28 }
   0xa   :  { %p208_p3 = scmp.ne.s32.totalorder %s31_s28, %s207_s14  ;;  %p213_p5 = scmp.lt.s32.totalorder %s207_s14, %s207_s14 }
   0xc   :  { %p214_p6 = por %p213_p5, %p212_p4 }
   0xe   :  { %p215_p7 = pnand %p214_p6, %p208_p3 }
  0x10   :  { %218 = shalt.err (!%p215_p7)
}
  0x11   :  { %33 = dma.hbm_to_vmem [thread:$0]  %s378_s3, 128, %s31_s28, [#allocation4]  }
  0x12   :  { %263 = dma.done.wait [#allocation4], 128  }
  0x13   :  { %264 = vsyncadd [#allocation4], 4294967168  ;;  %v43_v0 = vld [vmem:[%s376_s1] sm:$0xff]  ;;  %vm80_vm0 = vcmask 261120   ;;  %v84_v26 = vstv %s375_s0  ;;  %vm104_vm1 = vcmask 7168   ;;  %s271_s27 = smov [#allocation7]  }
  0x14   :  { %v44_v1 = vld [vmem:[%s377_s2] sm:$0xff]  ;;  %v57_v5 = vmul.f32 %v43_v0, %v43_v0  ;;  %s167_s28 = sshll.u32 %s271_s27, 4  ;;  %s168_s28 = int_to_ptr.vmem [resolvable:$true] %s167_s28 }
  0x15   :  { %v45_v2 = vld [vmem:[#allocation3] sm:$0xff]  ;;  %v71_v6 = vmul.f32 %v44_v1, %v44_v1  ;;  %v68_v8 = vadd.f32 %v44_v1, %v43_v0 }
  0x16   :  { %v180_v3 = vld [vmem:[%s380_s5] ss:$0 sm:$0xff]  ;;  %v73_v12 = vmul.f32 %v45_v2, %v45_v2  ;;  %v115_v24 = vsel %vm80_vm0, %v57_v5, 0.0 }
  0x17   :  { %v181_v4 = vld [vmem:[%s381_s6] ss:$0 sm:$0xff]  ;;  %v56_v7 = vadd.f32 %v180_v3, %v43_v0  ;;  %v72_v11 = vadd.f32 %v71_v6, %v57_v5  ;;  %v69_v14 = vadd.f32 %v68_v8, %v45_v2  ;;  %116 = vadd.xlane.f32.xlu1 %v115_v24  ;;  %v125_v25 = vsel %vm80_vm0, %v71_v6, 0.0 }
  0x18   :  { %v64_v9 = vadd.f32 %v181_v4, %v57_v5  ;;  %v46_v35 = vld [vmem:[%s379_s4] sm:$0xff]  ;;  %v136_v40 = vsel %vm80_vm0, %v73_v12, 0.0  ;;  %s270_s4 = smov [#allocation6]  }
  0x19   :  { %v65_v10 = vmul.f32 %v56_v7, %v56_v7  ;;  %v74_v16 = vadd.f32 %v73_v12, %v72_v11  ;;  %s157_s6 = sshll.u32 %s270_s4, 4  ;;  %s158_s6 = int_to_ptr.vmem [resolvable:$true] %s157_s6 }
  0x1a   :  { %s219_s10 = scalar_lea.vmem %s158_s6, 128  ;;  %p224_p9 = scmp.lt.s32.totalorder %s158_s6, %s158_s6 }
  0x1b   :  { %v66_v13 = vsub.f32 %v65_v10, %v64_v9  ;;  %126 = vadd.xlane.f32.xlu1 %v125_v25  ;;  %p220_p8 = scmp.ne.s32.totalorder %s158_s6, %s219_s10  ;;  %p225_p10 = scmp.lt.s32.totalorder %s219_s10, %s219_s10 }
  0x1d   :  { %v67_v15 = vmul.f32 0.5, %v66_v13  ;;  %p226_p11 = por %p225_p10, %p224_p9 }
  0x1f   :  { %v70_v17 = vadd.f32 %v69_v14, %v67_v15  ;;  %v75_v18 = vmul.f32 %v67_v15, %v67_v15  ;;  %p227_p12 = pnand %p226_p11, %p220_p8 }
  0x21   :  { %v76_v19 = vadd.f32 %v75_v18, %v74_v16  ;;  %v77_v20 = vmul.f32 %v70_v17, %v70_v17 }
  0x23   :  { %v78_v21 = vsub.f32 %v77_v20, %v76_v19 }
  0x25   :  { %v79_v22 = vmul.f32 0.5, %v78_v21 }
  0x27   :  { %v81_v23 = vsel %vm80_vm0, %v79_v22, 0.0 }
  0x28   :  { %82 = vadd.xlane.f32.xlu0 %v81_v23 }
  0xa4   :  { %v117_v41 = vpop.xlane.xlu1 %116 }
  0xa5   :  { %v118_v43 = vrot.slane %v117_v41, 4 }
  0xa7   :  { %v119_v45 = vadd.f32 %v118_v43, %v117_v41 }
  0xa8   :  { %v127_v42 = vpop.xlane.xlu1 %126 }
  0xa9   :  { %v128_v44 = vrot.slane %v127_v42, 4  ;;  %v120_v47 = vrot.slane %v119_v45, 2 }
  0xab   :  { %v129_v46 = vadd.f32 %v128_v44, %v127_v42  ;;  %v121_v53 = vadd.f32 %v120_v47, %v119_v45 }
  0xad   :  { %v130_v49 = vrot.slane %v129_v46, 2  ;;  %v122_v59 = vrot.slane %v121_v53, 1 }
  0xaf   :  { %v131_v54 = vadd.f32 %v130_v49, %v129_v46  ;;  %v123_v1 = vadd.f32 %v122_v59, %v121_v53 }
  0xb1   :  { %v132_v62 = vrot.slane %v131_v54, 1 }
  0xb3   :  { %v133_v2 = vadd.f32 %v132_v62, %v131_v54 }
  0xb5   :  { %v83_v27 = vpop.xlane.xlu0 %82 }
  0xb6   :  { %v85_v28 = vadd.f32 %v84_v26, %v83_v27 }
  0xb8   :  { %v86_v29 = vsub.f32 0.0, %v85_v28 }
  0xba   :  { %v87_v30 = vmul.f32 1.442695, %v86_v29 }
  0xbc   :  { %193 = vpow2.f32 %v87_v30 }
  0xc6   :  { %v194_v31 = vpop.eup %193 }
  0xc7   :  { %v89_v32 = vadd.f32 1.0, %v194_v31 }
  0xc9   :  { %195 = vrcp.f32 %v89_v32 }
  0xd3   :  { %v196_v33 = vpop.eup %195 }
  0xd4   :  { %v91_v34 = vmul.f32 4.0, %v196_v33 }
  0xd6   :  { %v92_v36 = vadd.f32 1.0, %v91_v34 }
  0xd8   :  { %v101_v37 = vsub.f32 %v92_v36, %v46_v35 }
  0xda   :  { %v103_v38 = vmul.f32 %v101_v37, %v101_v37 }
  0xdc   :  { %v105_v39 = vsel %vm104_vm1, %v103_v38, 0.0 }
  0xdd   :  { %106 = vadd.xlane.f32.xlu0 %v105_v39 }
  0xe1   :  { %137 = vadd.xlane.f32.xlu0 %v136_v40 }
 0x16a   :  { %v107_v48 = vpop.xlane.xlu0 %106 }
 0x16b   :  { %v108_v50 = vrot.slane %v107_v48, 4 }
 0x16d   :  { %v109_v51 = vadd.f32 %v108_v50, %v107_v48 }
 0x16e   :  { %v138_v52 = vpop.xlane.xlu0 %137 }
 0x16f   :  { %v110_v55 = vrot.slane %v109_v51, 2  ;;  %v139_v56 = vrot.slane %v138_v52, 4 }
 0x171   :  { %v140_v57 = vadd.f32 %v139_v56, %v138_v52  ;;  %v111_v58 = vadd.f32 %v110_v55, %v109_v51 }
 0x173   :  { %v141_v60 = vrot.slane %v140_v57, 2  ;;  %v112_v61 = vrot.slane %v111_v58, 1 }
 0x175   :  { %v142_v63 = vadd.f32 %v141_v60, %v140_v57  ;;  %v113_v0 = vadd.f32 %v112_v61, %v111_v58 }
 0x177   :  { %182 = vpush %v113_v0  ;;  %v143_v3 = vrot.slane %v142_v63, 1 }
 0x178   :  { %184 = vpush %v123_v1 }
 0x179   :  { %186 = vpush %v133_v2  ;;  %v144_v4 = vadd.f32 %v143_v3, %v142_v63 }
 0x17b   :  { %188 = vpush %v144_v4 }
 0x1a8   :  { %s183_s0 = spop %182 }
 0x1a9   :  { %v147_v5 = vstv %s183_s0  ;;  %s185_s25 = spop %184 }
 0x1aa   :  { %148 = vst [vmem:[#allocation6] sm:$0xff] %v147_v5  ;;  %s187_s26 = spop %186 }
 0x1ab   :  { %s135_s29 = sadd.f32 %s187_s26, %s185_s25 }
 0x1ac   :  { %s189_s30 = spop %188 }
 0x1ad   :  { %s146_s9 = sadd.f32 %s189_s30, %s135_s29 }
 0x1ae   :  { %230 = shalt.err (!%p227_p12)
}
 0x1af   :  { %s231_s13 = scalar_lea.hbm %s382_s7, 128 }
 0x1b0   :  { %p232_p13 = scmp.ne.s32.totalorder %s382_s7, %s231_s13  ;;  %p235_p0 = scmp.lt.u32.totalorder %s231_s13, %s382_s7 }
 0x1b2   :  { %p237_p1 = pnand %p235_p0, %p232_p13 }
 0x1b4   :  { %240 = shalt.err (!%p237_p1)
}
 0x1b5   :  { %160 = dma.vmem_to_hbm [thread:$0]  %s158_s6, 128, %s382_s7, [#allocation5]   ;;  %v149_v6 = vstv %s146_s9 }
 0x1b6   :  { %150 = vst [vmem:[#allocation7] sm:$0xff] %v149_v6  ;;  %s241_s20 = scalar_lea.vmem %s168_s28, 128  ;;  %p246_p3 = scmp.lt.s32.totalorder %s168_s28, %s168_s28 }
 0x1b7   :  { %p242_p2 = scmp.ne.s32.totalorder %s168_s28, %s241_s20  ;;  %p247_p4 = scmp.lt.s32.totalorder %s241_s20, %s241_s20 }
 0x1b9   :  { %p248_p5 = por %p247_p4, %p246_p3 }
 0x1bb   :  { %p249_p6 = pnand %p248_p5, %p242_p2 }
 0x1bd   :  { %252 = shalt.err (!%p249_p6)
}
 0x1be   :  { %s253_s23 = scalar_lea.hbm %s383_s8, 128 }
 0x1bf   :  { %p254_p7 = scmp.ne.s32.totalorder %s383_s8, %s253_s23  ;;  %p257_p8 = scmp.lt.u32.totalorder %s253_s23, %s383_s8 }
 0x1c1   :  { %p259_p9 = pnand %p257_p8, %p254_p7 }
 0x1c3   :  { %262 = shalt.err (!%p259_p9)
}
 0x1c4   :  { %170 = dma.vmem_to_hbm [thread:$0]  %s168_s28, 128, %s383_s8, [#allocation8]  }
 0x1c5   :  { %265 = dma.done.wait [#allocation5], 128  }
 0x1c6   :  { %266 = vsyncadd [#allocation5], 4294967168 }
 0x1c7   :  { %267 = dma.done.wait [#allocation8], 128  }
 0x1c8   :  { %268 = vsyncadd [#allocation8], 4294967168 }
 0x1c9   :  { %177 = vsyncpa [#allocation4], 1 }
 0x1ca   :  { %178 = vsyncpa [#allocation5], 1 }
 0x1cb   :  { %179 = vsyncpa [#allocation8], 1 }

</bundles_post_ra>
